<compile_context>
chip_gen: v7x
topology: tpu7x:2x2x1
jax: 0.10.0
libtpu: 0.0.40
codegen_flags: <defaults>
</compile_context>

<pallas_src>
import jax
import jax.numpy as jnp
from jax import lax
from jax.experimental import pallas as pl
from jax.experimental.pallas import tpu as pltpu


def decoder_kernel(z_ref, c_ref, w1a_ref, w1b_ref, b1_ref, w2_ref, bjl_ref,
                   loct_ref):
    # Layer 1: fused concat -> two MXU pushes accumulated in f32.
    h = jnp.tanh(
        jnp.dot(z_ref[...], w1a_ref[...], preferred_element_type=jnp.float32)
        + jnp.dot(c_ref[...], w1b_ref[...], preferred_element_type=jnp.float32)
        + b1_ref[...])                                            # (bm, hdim)

    # Layer 2 computed transposed: contract W2's hdim with h's hdim so the
    # result (adim, bm) is lane-dense (wide stores + wide output DMA).
    o_t = lax.dot_general(
        w2_ref[...], h,
        dimension_numbers=(((1,), (1,)), ((), ())),
        preferred_element_type=jnp.float32)                       # (adim, bm)

    b2 = bjl_ref[:, 0:1]                                          # (adim, 1)
    jl = bjl_ref[:, 1:2]                                          # (adim, 1)
    loct_ref[...] = jnp.tanh(o_t + b2) * jl
    # NOTE: a bf16 tanh (v6e/v7x EUP) would ~halve the EUP-bound portion but
    # loosens tolerance and regresses v5e; kept f32 for exact-ish numerics.


def _round_up(a, m):
    return (a + m - 1) // m * m


def decoder_forward(z, c, w1, b1, w2, b2, jointlimit, *, target_bm=2048):
    """Forward pass of Decoder.

    z: (B, zdim), c: (B, cdim)
    w1: (hdim, zdim+cdim), b1: (hdim,)      -- PyTorch nn.Linear layout
    w2: (anchor_dim, hdim), b2: (anchor_dim,)
    jointlimit: (anchor_dim,)
    Returns (loc, scale) of the Normal distribution.
    """
    B, zdim = z.shape
    _, cdim = c.shape
    hdim, xdim = w1.shape
    adim = w2.shape[0]
    assert xdim == zdim + cdim

    # Tiny one-time weight reshuffles (not B-dependent):
    # concat(z, c) @ W1^T == z @ W1[:, :zdim]^T + c @ W1[:, zdim:]^T
    w1a = jnp.transpose(w1[:, :zdim])                 # (zdim, hdim)
    w1b = jnp.transpose(w1[:, zdim:])                 # (cdim, hdim)
    b1_2d = b1.reshape(1, hdim)                       # (1, hdim)
    # Pack b2 and jointlimit into one small resident input.
    bjl = jnp.stack([b2, jointlimit.astype(b2.dtype)], axis=1)    # (adim, 2)

    # ---- adaptive batch tiling -------------------------------------------
    # Small B: one grid step over the 8-padded batch (latency-bound anyway).
    # Large B: tile is a multiple of 128 (output lane dim), chosen so the grid
    # has >= 2 parallel steps (v7x has 2 TensorCores) and padding waste is at
    # most bm-1 rows instead of a full oversized tile.
    if B <= 256:
        bm = _round_up(B, 8)
        grid = 1
    else:
        n_steps = max(2, pl.cdiv(B, target_bm))
        bm = _round_up(pl.cdiv(B, n_steps), 128)
        grid = pl.cdiv(B, bm)
    Bp = bm * grid
    if Bp != B:
        pad = Bp - B
        z = jnp.pad(z, ((0, pad), (0, 0)))
        c = jnp.pad(c, ((0, pad), (0, 0)))

    resident = lambda shape: pl.BlockSpec(shape, lambda i: (0, 0))

    loc_t = pl.pallas_call(
        decoder_kernel,
        out_shape=jax.ShapeDtypeStruct((adim, Bp), jnp.float32),
        grid_spec=pltpu.PrefetchScalarGridSpec(
            num_scalar_prefetch=0,
            grid=(grid,),
            in_specs=[
                pl.BlockSpec((bm, zdim), lambda i: (i, 0)),   # z tile
                pl.BlockSpec((bm, cdim), lambda i: (i, 0)),   # c tile
                resident((zdim, hdim)),                       # W1a (resident)
                resident((cdim, hdim)),                       # W1b (resident)
                resident((1, hdim)),                          # b1
                resident((adim, hdim)),                       # W2
                resident((adim, 2)),                          # [b2 | jointlimit]
            ],
            out_specs=pl.BlockSpec((adim, bm), lambda i: (0, i)),
        ),
        compiler_params=pltpu.CompilerParams(
            dimension_semantics=("parallel",)),
    )(z, c, w1a, w1b, b1_2d, w2, bjl)

    loc = jnp.transpose(loc_t[:, :B])      # tiny (2, B) -> (B, 2)
    scale = jnp.ones_like(loc)             # constant; no kernel store needed
    return loc, scale


def reference_forward(z, c, w1, b1, w2, b2, jointlimit):
    x = jnp.concatenate([z, c], axis=1)
    h = jnp.tanh(x @ w1.T + b1)
    loc = jnp.tanh(h @ w2.T + b2) * jointlimit
    return loc, jnp.ones_like(loc)


if __name__ == "__main__":
    # Module hyper-params from __init__ defaults.
    anchor_dim, cdim, zdim, hdim = 2, 4, 10, 128
    std = 0.3                              # init std from get_linear_layer(std=0.3)

    key = jax.random.PRNGKey(0)
    k_z, k_c, k_w1, k_b1, k_w2, k_b2 = jax.random.split(key, 6)

    # Deterministic synthetic parameters in PyTorch nn.Linear layout (out, in).
    w1 = std * jax.random.normal(k_w1, (hdim, zdim + cdim), dtype=jnp.float32)
    b1 = std * jax.random.normal(k_b1, (hdim,), dtype=jnp.float32)
    w2 = std * jax.random.normal(k_w2, (anchor_dim, hdim), dtype=jnp.float32)
    b2 = std * jax.random.normal(k_b2, (anchor_dim,), dtype=jnp.float32)
    jointlimit = jnp.array([3.14, 2.22], dtype=jnp.float32)

    ok = True
    for B in (16, 300):                    # single-tile path and multi-tile path
        kz, kc = jax.random.split(jax.random.fold_in(key, B))
        z = jax.random.normal(kz, (B, zdim), dtype=jnp.float32)
        c = jax.random.normal(kc, (B, cdim), dtype=jnp.float32)

        loc, scale = decoder_forward(z, c, w1, b1, w2, b2, jointlimit)
        jax.block_until_ready((loc, scale))

        loc_ref, scale_ref = reference_forward(z, c, w1, b1, w2, b2, jointlimit)
        ok &= bool(jnp.allclose(loc, loc_ref, atol=1e-4, rtol=1e-4))
        ok &= bool(jnp.allclose(scale, scale_ref))

    assert ok
    # TODO(synk): torch.distributions.Normal has no Pallas equivalent; the
    # kernel returns its sufficient parameters (loc, scale).
    print("KERNEL_OK")
</pallas_src>

<mosaic_0001>
module attributes {stable_mosaic.version = 11 : i64} {
  func.func @decoder_kernel(%arg0: i32, %arg1: memref<16x10xf32, #tpu.memory_space<vmem>>, %arg2: memref<16x4xf32, #tpu.memory_space<vmem>>, %arg3: memref<10x128xf32, #tpu.memory_space<vmem>>, %arg4: memref<4x128xf32, #tpu.memory_space<vmem>>, %arg5: memref<1x128xf32, #tpu.memory_space<vmem>>, %arg6: memref<2x128xf32, #tpu.memory_space<vmem>>, %arg7: memref<2x2xf32, #tpu.memory_space<vmem>>, %arg8: memref<2x16xf32, #tpu.memory_space<vmem>>) attributes {dimension_semantics = [#tpu.dimension_semantics<parallel>], iteration_bounds = array<i64: 1>, scalar_prefetch = 0 : i64, scratch_operands = 0 : i64, tpu.core_type = #tpu.core_type<tc>, window_params = [{transform_indices = @transform_0, window_bounds = array<i64: 16, 10>}, {transform_indices = @transform_1, window_bounds = array<i64: 16, 4>}, {pipeline_mode = #tpu.pipeline_mode<synchronous>, transform_indices = @transform_2, window_bounds = array<i64: 10, 128>}, {pipeline_mode = #tpu.pipeline_mode<synchronous>, transform_indices = @transform_3, window_bounds = array<i64: 4, 128>}, {pipeline_mode = #tpu.pipeline_mode<synchronous>, transform_indices = @transform_4, window_bounds = array<i64: 1, 128>}, {pipeline_mode = #tpu.pipeline_mode<synchronous>, transform_indices = @transform_5, window_bounds = array<i64: 2, 128>}, {pipeline_mode = #tpu.pipeline_mode<synchronous>, transform_indices = @transform_6, window_bounds = array<i64: 2, 2>}, {transform_indices = @transform_7, window_bounds = array<i64: 2, 16>}]} {
    %c0 = arith.constant 0 : index
    %c0_0 = arith.constant 0 : index
    %0 = vector.load %arg1[%c0, %c0_0] : memref<16x10xf32, #tpu.memory_space<vmem>>, vector<16x10xf32>
    %c0_1 = arith.constant 0 : index
    %c0_2 = arith.constant 0 : index
    %1 = vector.load %arg3[%c0_1, %c0_2] : memref<10x128xf32, #tpu.memory_space<vmem>>, vector<10x128xf32>
    %cst = arith.constant dense<0.000000e+00> : vector<16x128xf32>
    %2 = tpu.matmul %0, %1, %cst {dimension_numbers = #tpu.dot_dimension_numbers<[1], [0], [0], [1], [0, 0, 1, 1], [], []>} : vector<16x10xf32>, vector<10x128xf32>, vector<16x128xf32> -> vector<16x128xf32>
    %c0_3 = arith.constant 0 : index
    %c0_4 = arith.constant 0 : index
    %3 = vector.load %arg2[%c0_3, %c0_4] : memref<16x4xf32, #tpu.memory_space<vmem>>, vector<16x4xf32>
    %c0_5 = arith.constant 0 : index
    %c0_6 = arith.constant 0 : index
    %4 = vector.load %arg4[%c0_5, %c0_6] : memref<4x128xf32, #tpu.memory_space<vmem>>, vector<4x128xf32>
    %cst_7 = arith.constant dense<0.000000e+00> : vector<16x128xf32>
    %5 = tpu.matmul %3, %4, %cst_7 {dimension_numbers = #tpu.dot_dimension_numbers<[1], [0], [0], [1], [0, 0, 1, 1], [], []>} : vector<16x4xf32>, vector<4x128xf32>, vector<16x128xf32> -> vector<16x128xf32>
    %6 = arith.addf %2, %5 : vector<16x128xf32>
    %c0_8 = arith.constant 0 : index
    %c0_9 = arith.constant 0 : index
    %7 = vector.load %arg5[%c0_8, %c0_9] : memref<1x128xf32, #tpu.memory_space<vmem>>, vector<1x128xf32>
    %8 = vector.broadcast %7 : vector<1x128xf32> to vector<16x128xf32>
    %9 = arith.addf %6, %8 : vector<16x128xf32>
    %10 = math.tanh %9 : vector<16x128xf32>
    %c0_10 = arith.constant 0 : index
    %c0_11 = arith.constant 0 : index
    %11 = vector.load %arg6[%c0_10, %c0_11] : memref<2x128xf32, #tpu.memory_space<vmem>>, vector<2x128xf32>
    %cst_12 = arith.constant dense<0.000000e+00> : vector<2x16xf32>
    %12 = tpu.matmul %11, %10, %cst_12 {dimension_numbers = #tpu.dot_dimension_numbers<[1], [1], [0], [0], [0, 0, 1, 0], [], []>} : vector<2x128xf32>, vector<16x128xf32>, vector<2x16xf32> -> vector<2x16xf32>
    %c0_13 = arith.constant 0 : index
    %c0_14 = arith.constant 0 : index
    %13 = vector.load %arg7[%c0_13, %c0_14] : memref<2x2xf32, #tpu.memory_space<vmem>>, vector<2x1xf32>
    %c0_15 = arith.constant 0 : index
    %c1 = arith.constant 1 : index
    %14 = vector.load %arg7[%c0_15, %c1] : memref<2x2xf32, #tpu.memory_space<vmem>>, vector<2x1xf32>
    %15 = vector.broadcast %13 : vector<2x1xf32> to vector<2x16xf32>
    %16 = arith.addf %12, %15 : vector<2x16xf32>
    %17 = math.tanh %16 : vector<2x16xf32>
    %18 = vector.broadcast %14 : vector<2x1xf32> to vector<2x16xf32>
    %19 = arith.mulf %17, %18 : vector<2x16xf32>
    %c0_16 = arith.constant 0 : index
    %c0_17 = arith.constant 0 : index
    %20 = vector.load %arg8[%c0_16, %c0_17] : memref<2x16xf32, #tpu.memory_space<vmem>>, vector<2x16xf32>
    tpu.vector_store %arg8[%c0_16, %c0_17], %19 {strides = array<i32>} : memref<2x16xf32, #tpu.memory_space<vmem>>, vector<2x16xf32>,
    return
  }
  func.func @transform_0(%arg0: i32) -> (i32, i32) {
    %c0_i32 = arith.constant 0 : i32
    %c0_i32_0 = arith.constant 0 : i32
    return %arg0, %c0_i32 : i32, i32
  }
  func.func @transform_1(%arg0: i32) -> (i32, i32) {
    %c0_i32 = arith.constant 0 : i32
    %c0_i32_0 = arith.constant 0 : i32
    return %arg0, %c0_i32 : i32, i32
  }
  func.func @transform_2(%arg0: i32) -> (i32, i32) {
    %c0_i32 = arith.constant 0 : i32
    %c0_i32_0 = arith.constant 0 : i32
    %c0_i32_1 = arith.constant 0 : i32
    return %c0_i32, %c0_i32_0 : i32, i32
  }
  func.func @transform_3(%arg0: i32) -> (i32, i32) {
    %c0_i32 = arith.constant 0 : i32
    %c0_i32_0 = arith.constant 0 : i32
    %c0_i32_1 = arith.constant 0 : i32
    return %c0_i32, %c0_i32_0 : i32, i32
  }
  func.func @transform_4(%arg0: i32) -> (i32, i32) {
    %c0_i32 = arith.constant 0 : i32
    %c0_i32_0 = arith.constant 0 : i32
    %c0_i32_1 = arith.constant 0 : i32
    return %c0_i32, %c0_i32_0 : i32, i32
  }
  func.func @transform_5(%arg0: i32) -> (i32, i32) {
    %c0_i32 = arith.constant 0 : i32
    %c0_i32_0 = arith.constant 0 : i32
    %c0_i32_1 = arith.constant 0 : i32
    return %c0_i32, %c0_i32_0 : i32, i32
  }
  func.func @transform_6(%arg0: i32) -> (i32, i32) {
    %c0_i32 = arith.constant 0 : i32
    %c0_i32_0 = arith.constant 0 : i32
    %c0_i32_1 = arith.constant 0 : i32
    return %c0_i32, %c0_i32_0 : i32, i32
  }
  func.func @transform_7(%arg0: i32) -> (i32, i32) {
    %c0_i32 = arith.constant 0 : i32
    %c0_i32_0 = arith.constant 0 : i32
    return %c0_i32, %arg0 : i32, i32
  }
}

</mosaic_0001>

<bundles_post_ra>
// kernel: tpu_custom_call.1
= control target key start
LH: loop header
LB: loop body
LE: loop exit
PB: predicated region body
PF: predicated region fallthrough
CT: control target
= control target key end

     0   :  { %12 = vsyncpa [#allocation3], 0  ;;  %s542_s0 = inlined_call_operand.vmem [shape: f32[16,10], index: 0, kind: input, shape index: {}]   ;;  %s543_s1 = inlined_call_operand.vmem [shape: f32[16,4], index: 1, kind: input, shape index: {}]   ;;  %s544_s2 = inlined_call_operand.hbm [shape: f32[10,128], index: 2, kind: input, shape index: {}]   ;;  %s545_s3 = inlined_call_operand.vmem [shape: f32[4,128], index: 3, kind: input, shape index: {}]   ;;  %s546_s4 = inlined_call_operand.vmem [shape: f32[1,128], index: 4, kind: input, shape index: {}]   ;;  %s547_s5 = inlined_call_operand.vmem [shape: f32[2,128], index: 5, kind: input, shape index: {}]   ;;  %s548_s6 = inlined_call_operand.vmem [shape: f32[2,2], index: 6, kind: input, shape index: {}]   ;;  %s549_s7 = inlined_call_operand.hbm [shape: f32[2,16], index: 7, kind: output, shape index: {}]  }
   0x1   :  { %13 = vsyncpa [#allocation4], 0  ;;  %s444_s24 = smov [#allocation2]   ;;  %s396_s28 = scalar_lea.hbm %s544_s2, 256 }
   0x2   :  { %s23_s25 = sshll.u32 %s444_s24, 4  ;;  %p397_p0 = scmp.ne.s32.totalorder %s544_s2, %s396_s28  ;;  %s24_s25 = int_to_ptr.vmem [resolvable:$true] %s23_s25 }
   0x3   :  { %p400_p1 = scmp.lt.u32.totalorder %s396_s28, %s544_s2 }
   0x5   :  { %p402_p2 = pnand %p400_p1, %p397_p0 }
   0x7   :  { %405 = shalt.err (!%p402_p2)
}
   0x8   :  { %s406_s10 = scalar_lea.vmem %s24_s25, 256  ;;  %p411_p4 = scmp.lt.s32.totalorder %s24_s25, %s24_s25 }
   0x9   :  { %p407_p3 = scmp.ne.s32.totalorder %s24_s25, %s406_s10  ;;  %p412_p5 = scmp.lt.s32.totalorder %s406_s10, %s406_s10 }
   0xb   :  { %p413_p6 = por %p412_p5, %p411_p4 }
   0xd   :  { %p414_p7 = pnand %p413_p6, %p407_p3 }
   0xf   :  { %417 = shalt.err (!%p414_p7)
}
  0x10   :  { %s445_s11 = smov 128   ;;  %s446_s12 = smov 8  }
  0x11   :  { %29 = dma.hbm_to_vmem [thread:$0]  %s544_s2, 256, %s24_s25, [#allocation3], %s445_s11, %s445_s11, %s446_s12  }
  0x12   :  { %440 = dma.done.wait [#allocation3], 256  }
  0x13   :  { %441 = vsyncadd [#allocation3], 4294967040  ;;  %vm141_vm0 = vcmask 1041408   ;;  %vm55_vm1 = vcmask 1043456   ;;  %vm48_vm2 = vcmask 31744   ;;  %vm447_vm3 = vmmov 1  }
  0x14   :  { %vm368_vm4 = vmpackc.low %vm141_vm0, %vm447_vm3  ;;  %v47_v0 = vld [vmem:[%s545_s3] sm:$0xf]  ;;  %v46_v2 = vld [vmem:[%s543_s1 + $0x8] sm:$0xff]  ;;  %vm134_vm5 = vcmask 80896   ;;  %v448_v8 = vmov 0.0|0.0   ;;  %vm449_vm6 = vmmov 0  }
  0x15   :  { %v45_v1 = vld [vmem:[%s543_s1] sm:$0xff]  ;;  %348 = vmatprep.subr.msk.mxu0 %vm55_vm1, %v47_v0  ;;  %v44_v4 = vld [vmem:[#allocation2 + $0x8] sm:$0x3]  ;;  %373 = vmatprep.subr.bf16.mxu1 %v448_v8  ;;  %v450_v9 = vmov 0.0   ;;  %v451_v11 = vmov 0   ;;  %v452_v12 = vmov 1  }
  0x16   :  { %350 = vmatprep.mubr.msk.f32.mxu0 %vm48_vm2, %v45_v1  ;;  %v43_v3 = vld [vmem:[#allocation2] sm:$0xff]  ;;  %349 = vmatpush3.msk.msra.mxu0 %vm55_vm1, %v47_v0  ;;  %v42_v7 = vld [vmem:[%s542_s0 + $0x8] sm:$0xff]  ;;  %vm314_vm7 = vcmask 123904  }
  0x17   :  { %v41_v5 = vld [vmem:[%s542_s0] sm:$0xff]  ;;  %v367_v6 = vpack.c.bf16 %v44_v4, %v43_v3  ;;  %351 = vmatmul.mubr.msk.f32.vlgmr.msra.gmra.mrb[0].mxu0 %vm48_vm2, %v46_v2  ;;  %364 = vmatprep.mubr.msk.f32.mxu1 %vm449_vm6, %v450_v9 }
  0x18   :  { %357 = vmatprep.mubr.msk.f32.mxu0 %vm134_vm5, %v41_v5  ;;  %v232_v10 = vld [vmem:[%s548_s6] sm:$0x3]  ;;  %388 = vset.pattern.permute.xlu0 %v451_v11 }
  0x19   :  { %369 = vmatprep.subr.msk.bf16.mxu0 %vm368_vm4, %v367_v6  ;;  %235 = vperm.xlu0 %388, %v232_v10   ;;  %v337_v13 = vld [vmem:[%s546_s4] ss:$0 sm:$0xff]  ;;  %s453_s4 = smov [#allocation5]  }
  0x1a   :  { %372 = vmatpush3.bf16.msk.msra.mxu0 %vm368_vm4, %v367_v6  ;;  %v231_v21 = vld [vmem:[%s547_s5] sm:$0x3]  ;;  %s322_s26 = sshll.u32 %s453_s4, 4  ;;  %s323_s26 = int_to_ptr.vmem [resolvable:$true] %s322_s26 }
  0x1b   :  { %s418_s27 = scalar_lea.vmem %s323_s26, 32  ;;  %p423_p9 = scmp.lt.s32.totalorder %s323_s26, %s323_s26 }
  0x1c   :  { %p419_p8 = scmp.ne.s32.totalorder %s323_s26, %s418_s27  ;;  %p424_p10 = scmp.lt.s32.totalorder %s418_s27, %s418_s27 }
  0x1d   :  { %389 = vset.pattern.permute.xlu0 %v452_v12 }
  0x1e   :  { %310 = vperm.xlu0 %389, %v232_v10   ;;  %p425_p11 = por %p424_p10, %p423_p9 }
  0x1f   :  { %358 = vmatmul.mubr.msk.f32.vlgmr.msra.gmra.mrb[0].mxu0 %vm134_vm5, %v42_v7 }
  0x20   :  { %p426_p12 = pnand %p425_p11, %p419_p8 }
  0x98   :  { %v236_v22 = vpop.permute.xlu0 %235 }
  0x9d   :  { %v311_v26 = vpop.permute.xlu0 %310 }
  0xf2   :  { %v359_v14 = vpop.f32.mrb[0].mxu0 }
  0xf3   :  { %v228_v15 = vadd.f32 %v359_v14, %v337_v13  ;;  %v211_v16 = vpop.f32.mrb[1].mxu0 }
  0xf4   :  { %v227_v17 = vadd.f32 %v337_v13, %v211_v16 }
  0xf5   :  { %390 = vtanh.f32 %v228_v15 }
  0xf6   :  { %392 = vtanh.f32 %v227_v17 }
  0xff   :  { %v391_v18 = vpop.eup %390 }
 0x100   :  { %v393_v19 = vpop.eup %392 }
 0x101   :  { %v374_v20 = vpack.c.bf16 %v391_v18, %v393_v19 }
 0x103   :  { %375 = vmatpush3.bf16.xpose.msra.mxu1 %v374_v20 }
 0x10a   :  { %365 = vmatmul.mubr.f32.vlgmr.msra.gmra.mrb[0].mxu1 %v231_v21 }
 0x1dd   :  { %v304_v23 = vpop.f32.mrb[0].mxu1 }
 0x1de   :  { %v305_v24 = vadd.f32 %v304_v23, %v236_v22  ;;  %v366_v25 = vpop.f32.mrb[1].mxu1 }
 0x1e0   :  { %394 = vtanh.f32 %v305_v24 }
 0x1ea   :  { %v395_v27 = vpop.eup %394 }
 0x1eb   :  { %v313_v28 = vmul.f32 %v395_v27, %v311_v26 }
 0x1ed   :  { %315 = vst.msk [vmem:[#allocation5] sm:$0x3] %vm314_vm7, %v313_v28 }
 0x1ee   :  { %429 = shalt.err (!%p426_p12)
}
 0x1ef   :  { %s430_s29 = scalar_lea.hbm %s549_s7, 32 }
 0x1f0   :  { %p431_p13 = scmp.ne.s32.totalorder %s549_s7, %s430_s29  ;;  %p434_p0 = scmp.lt.u32.totalorder %s430_s29, %s549_s7 }
 0x1f2   :  { %p436_p1 = pnand %p434_p0, %p431_p13 }
 0x1f4   :  { %439 = shalt.err (!%p436_p1)
}
 0x1f5   :  { %325 = dma.vmem_to_hbm [thread:$0]  %s323_s26, 32, %s549_s7, [#allocation4]  }
 0x1f6   :  { %442 = dma.done.wait [#allocation4], 32  }
 0x1f7   :  { %443 = vsyncadd [#allocation4], 4294967264 }
 0x1f8   :  { %329 = vsyncpa [#allocation3], 1 }
 0x1f9   :  { %330 = vsyncpa [#allocation4], 1 }

</bundles_post_ra>
